<compile_context>
chip_gen: v7x
topology: tpu7x:2x2x1
jax: 0.10.0
libtpu: 0.0.40
codegen_flags: <defaults>
</compile_context>

<pallas_src>
import functools

import jax
import jax.numpy as jnp
from jax.experimental import pallas as pl
from jax.experimental.pallas import tpu as pltpu


# ---------------------------------------------------------------------------
# Fused multi-channel attention + classifier head kernel.
# One (batch, S-tile) block per program; channels unrolled inside.
# ---------------------------------------------------------------------------
def _fused_attn_classifier_kernel(cw_ref, hidden_ref, emb_ref, mask_ref,
                                  w1_ref, w2_ref, bias_ref, out_ref, *,
                                  inv_temper, C, L, H):
    b = pl.program_id(0)

    hs = hidden_ref[0]                                   # (TS, H)   bf16
    emb_all = emb_ref[0]                                 # (C*L, H)  bf16

    # u = hs @ emb_all^T / temper  -- NT contraction, no explicit transpose.
    u = jax.lax.dot_general(
        hs, emb_all,
        dimension_numbers=(((1,), (1,)), ((), ())),
        preferred_element_type=jnp.float32) * inv_temper  # (TS, C*L) f32

    # One EUP pass over the whole lane-dense slab (matches torch.exp(u)).
    e = jnp.exp(u)

    # Sequence-output part of the classifier (K-split: no concat needed).
    acc = jnp.dot(hs, w1_ref[...], preferred_element_type=jnp.float32)  # (TS, NPAD)

    for c in range(C):                                   # static unroll, C is small
        e_c = e[:, c * L:(c + 1) * L]                    # (TS, L) f32, static slice
        mask_c = jnp.clip(mask_ref[0, c].astype(jnp.float32), 0.0, 1.0)  # (TS, L)
        delta = e_c * mask_c
        denom = jnp.sum(delta, axis=-1, keepdims=True) + 1e-10
        # Channel weight folded into the per-row normalization scalar.
        scale = pl.reciprocal(denom, approx=True) * cw_ref[b, c]
        attn = (delta * scale).astype(jnp.bfloat16)      # (TS, L) bf16

        emb_c = emb_all[c * L:(c + 1) * L, :]            # (L, H) bf16, static slice
        char_attn = jnp.dot(attn, emb_c,
                            preferred_element_type=jnp.float32)          # (TS, H) f32

        # Accumulate this channel's classifier contribution directly; the
        # (S, C*H) activation is never materialized.
        acc = acc + jnp.dot(char_attn.astype(jnp.bfloat16),
                            w2_ref[c * H:(c + 1) * H, :],
                            preferred_element_type=jnp.float32)          # (TS, NPAD)

    out_ref[0] = acc + bias_ref[...]                     # (TS, NPAD) f32, lane-dense


def fused_attention_classifier(word_emb_bf16, channel_weight_table, gram_list,
                               hidden_bf16, matching_matrix, channel_ids,
                               w1, w2, bias):
    B, S, H = hidden_bf16.shape
    C = matching_matrix.shape[1]
    L = gram_list.shape[2]
    NPAD = w1.shape[1]

    # Glue in plain JAX: n-gram embedding gather + tiny channel softmax.
    emb_flat = word_emb_bf16[gram_list].reshape(B, C * L, H)       # (B, C*L, H) bf16
    cw = channel_weight_table[channel_ids][..., 0]                 # (B, C)
    channel_w = jax.nn.softmax(cw, axis=1).astype(jnp.float32)     # (B, C) -> SMEM

    inv_temper = 1.0 / (float(H) ** 0.5)

    # S-tile axis (parallel): feeds both v7x TensorCores even at B=1 and gives
    # the pipeline more steps; full-S block when S has no clean divisor.
    TS = S
    for cand in (256, 128, 64, 32, 16, 8):
        if S % cand == 0:
            TS = cand
            break
    grid = (B, S // TS)

    logits = pl.pallas_call(
        functools.partial(_fused_attn_classifier_kernel,
                          inv_temper=inv_temper, C=C, L=L, H=H),
        out_shape=jax.ShapeDtypeStruct((B, S, NPAD), jnp.float32),
        grid_spec=pltpu.PrefetchScalarGridSpec(
            num_scalar_prefetch=0,
            grid=grid,
            in_specs=[
                pl.BlockSpec(memory_space=pltpu.MemorySpace.SMEM),       # channel_w [B,C]
                pl.BlockSpec((1, TS, H), lambda b, s: (b, s, 0)),        # hidden state
                pl.BlockSpec((1, C * L, H), lambda b, s: (b, 0, 0)),     # gathered embeddings
                pl.BlockSpec((1, C, TS, L), lambda b, s: (b, 0, s, 0)),  # mask (orig dtype)
                pl.BlockSpec((H, NPAD), lambda b, s: (0, 0)),            # w1 (seq part)
                pl.BlockSpec((C * H, NPAD), lambda b, s: (0, 0)),        # w2 (attn part)
                pl.BlockSpec((1, NPAD), lambda b, s: (0, 0)),            # fused bias
            ],
            out_specs=pl.BlockSpec((1, TS, NPAD), lambda b, s: (b, s, 0)),
        ),
        compiler_params=pltpu.CompilerParams(
            dimension_semantics=("parallel", "parallel")),
    )(channel_w, hidden_bf16, emb_flat, matching_matrix, w1, w2, bias)

    return logits                                                  # (B, S, NPAD) f32


# ---------------------------------------------------------------------------
# One-time (un-jitted) parameter preprocessing, hoisted out of the forward.
# ---------------------------------------------------------------------------
def prepare_params(params):
    H = params["bert_embedding"].shape[1]
    nseg = params["w_seg"].shape[0]
    npos = params["w_pos"].shape[0]
    n_out = nseg + npos
    NPAD = -(-n_out // 128) * 128                        # lane-dense output width

    # Fuse seg+pos heads, pre-transpose, zero-pad N to 128, split K (seq | attn).
    w_all_t = jnp.transpose(
        jnp.concatenate([params["w_seg"], params["w_pos"]], axis=0))   # (Hcat, n_out)
    Hcat = w_all_t.shape[0]
    w_pad = jnp.zeros((Hcat, NPAD), jnp.float32).at[:, :n_out].set(w_all_t)
    bias = jnp.zeros((1, NPAD), jnp.float32).at[0, :n_out].set(
        jnp.concatenate([params["b_seg"], params["b_pos"]]))

    p = dict(params)
    p["word_embedding_bf16"] = params["word_embedding"].astype(jnp.bfloat16)
    p["w1"] = w_pad[:H].astype(jnp.bfloat16)             # (H, NPAD)    seq part
    p["w2"] = w_pad[H:].astype(jnp.bfloat16)             # (C*H, NPAD)  attn part
    p["bias_pad"] = bias                                 # (1, NPAD)
    return p


# ---------------------------------------------------------------------------
# BertSegPos forward (use_attention=True, eval mode, no labels -> no CRF loss).
# ---------------------------------------------------------------------------
def bert_segpos_forward(params, input_ids, gram_list, matching_matrix, channel_ids):
    # TODO(synk): stand-in for the pretrained BERT encoder output.
    sequence_output = params["bert_embedding"][input_ids]            # (B, S, H) f32
    seq_bf16 = sequence_output.astype(jnp.bfloat16)                  # MXU operand dtype

    logits = fused_attention_classifier(
        params["word_embedding_bf16"], params["channel_weight"],
        gram_list, seq_bf16, matching_matrix, channel_ids,
        params["w1"], params["w2"], params["bias_pad"])              # (B, S, NPAD)

    # "[layer[1:] for layer in sequence_output]" + head split applied to the tiny
    # logits AFTER the kernel (keeps kernel blocks (8,128)-aligned).
    nseg = params["b_seg"].shape[0]
    npos = params["b_pos"].shape[0]
    logits = logits[:, 1:, :]
    return ((logits[..., :nseg], logits[..., nseg:nseg + npos]),)


# ---------------------------------------------------------------------------
# Pure-JAX f32 reference (faithful to the PyTorch module) for correctness check.
# ---------------------------------------------------------------------------
def _reference_forward(params, input_ids, gram_list, matching_matrix, channel_ids):
    seq = params["bert_embedding"][input_ids]                             # (B,S,H)
    B, S, H = seq.shape
    C = matching_matrix.shape[1]
    emb = params["word_embedding"][gram_list]                             # (B,C,L,H)
    u = jnp.einsum("bsh,bclh->bcsl", seq, emb) / (H ** 0.5)
    mask = jnp.clip(matching_matrix.astype(jnp.float32), 0.0, 1.0)
    delta = jnp.exp(u) * mask
    attn = delta / (jnp.sum(delta, axis=3, keepdims=True) + 1e-10)
    char_attn = jnp.einsum("bcsl,bclh->bcsh", attn, emb)
    cw = jax.nn.softmax(params["channel_weight"][channel_ids][..., 0], axis=1)
    char_attn = char_attn * cw[:, :, None, None]
    attn_out = jnp.transpose(char_attn, (0, 2, 1, 3)).reshape(B, S, C * H)
    full = jnp.concatenate([seq, attn_out], axis=2)[:, 1:, :]
    seg = full @ params["w_seg"].T + params["b_seg"]
    pos = full @ params["w_pos"].T + params["b_pos"]
    return seg, pos


if __name__ == "__main__":
    # Small shapes consistent with the module.
    B, S, H = 2, 8, 32          # batch, char seq len, hidden_size
    C, L = 4, 8                 # cat_num (channels), word seq len
    NGRAM, VOCAB = 16, 64
    NUM_SEG, NUM_POS = 5, 7

    key = jax.random.PRNGKey(0)
    keys = jax.random.split(key, 12)

    word_emb = 0.1 * jax.random.normal(keys[0], (NGRAM, H), jnp.float32)
    word_emb = word_emb.at[0].set(0.0)                          # padding_idx=0
    params = {
        "bert_embedding": 0.1 * jax.random.normal(keys[1], (VOCAB, H), jnp.float32),
        "word_embedding": word_emb,
        "channel_weight": 0.1 * jax.random.normal(keys[2], (C, 1), jnp.float32),
        "w_seg": 0.1 * jax.random.normal(keys[3], (NUM_SEG, H * (1 + C)), jnp.float32),
        "b_seg": 0.1 * jax.random.normal(keys[4], (NUM_SEG,), jnp.float32),
        "w_pos": 0.1 * jax.random.normal(keys[5], (NUM_POS, H * (1 + C)), jnp.float32),
        "b_pos": 0.1 * jax.random.normal(keys[6], (NUM_POS,), jnp.float32),
    }

    input_ids = jax.random.randint(keys[7], (B, S), 0, VOCAB, jnp.int32)
    gram_list = jax.random.randint(keys[8], (B, C, L), 0, NGRAM, jnp.int32)
    matching_matrix = jax.random.randint(keys[9], (B, C, S, L), 0, 3,
                                         jnp.int32).astype(jnp.float32)
    channel_ids = jnp.broadcast_to(jnp.arange(C, dtype=jnp.int32), (B, C))

    prepared = prepare_params(params)   # one-time weight fusion / padding / bf16 cast

    ((logits_seg, logits_pos),) = jax.jit(bert_segpos_forward)(
        prepared, input_ids, gram_list, matching_matrix, channel_ids)
    jax.block_until_ready((logits_seg, logits_pos))

    ref_seg, ref_pos = _reference_forward(
        params, input_ids, gram_list, matching_matrix, channel_ids)
    assert logits_seg.shape == (B, S - 1, NUM_SEG)
    assert logits_pos.shape == (B, S - 1, NUM_POS)
    # bf16 MXU operands + approx reciprocal -> slightly looser tolerance than pure-f32.
    assert jnp.allclose(logits_seg, ref_seg, atol=2e-2, rtol=2e-2)
    assert jnp.allclose(logits_pos, ref_pos, atol=2e-2, rtol=2e-2)

    print("KERNEL_OK")
</pallas_src>

<mosaic_0001>
module attributes {stable_mosaic.version = 11 : i64} {
  func.func @_fused_attn_classifier_kernel(%arg0: i32, %arg1: i32, %arg2: memref<2x4xf32, #tpu.memory_space<smem>>, %arg3: memref<1x8x32xbf16, #tpu.memory_space<vmem>>, %arg4: memref<1x32x32xbf16, #tpu.memory_space<vmem>>, %arg5: memref<1x4x8x8xf32, #tpu.memory_space<vmem>>, %arg6: memref<32x128xbf16, #tpu.memory_space<vmem>>, %arg7: memref<128x128xbf16, #tpu.memory_space<vmem>>, %arg8: memref<1x128xf32, #tpu.memory_space<vmem>>, %arg9: memref<1x8x128xf32, #tpu.memory_space<vmem>>) attributes {dimension_semantics = [#tpu.dimension_semantics<parallel>, #tpu.dimension_semantics<parallel>], iteration_bounds = array<i64: 2, 1>, scalar_prefetch = 0 : i64, scratch_operands = 0 : i64, tpu.core_type = #tpu.core_type<tc>, window_params = [{transform_indices = @transform_0, window_bounds = array<i64: 2, 4>}, {transform_indices = @transform_1, window_bounds = array<i64: 1, 8, 32>}, {transform_indices = @transform_2, window_bounds = array<i64: 1, 32, 32>}, {transform_indices = @transform_3, window_bounds = array<i64: 1, 4, 8, 8>}, {pipeline_mode = #tpu.pipeline_mode<synchronous>, transform_indices = @transform_4, window_bounds = array<i64: 32, 128>}, {pipeline_mode = #tpu.pipeline_mode<synchronous>, transform_indices = @transform_5, window_bounds = array<i64: 128, 128>}, {pipeline_mode = #tpu.pipeline_mode<synchronous>, transform_indices = @transform_6, window_bounds = array<i64: 1, 128>}, {transform_indices = @transform_7, window_bounds = array<i64: 1, 8, 128>}]} {
    %c0 = arith.constant 0 : index
    %c0_0 = arith.constant 0 : index
    %c0_1 = arith.constant 0 : index
    %0 = vector.load %arg3[%c0, %c0_0, %c0_1] : memref<1x8x32xbf16, #tpu.memory_space<vmem>>, vector<1x8x32xbf16>
    %1 = vector.shape_cast %0 : vector<1x8x32xbf16> to vector<8x32xbf16>
    %c0_2 = arith.constant 0 : index
    %c0_3 = arith.constant 0 : index
    %c0_4 = arith.constant 0 : index
    %2 = vector.load %arg4[%c0_2, %c0_3, %c0_4] : memref<1x32x32xbf16, #tpu.memory_space<vmem>>, vector<1x32x32xbf16>
    %3 = vector.shape_cast %2 : vector<1x32x32xbf16> to vector<32x32xbf16>
    %cst = arith.constant dense<0.000000e+00> : vector<8x32xf32>
    %4 = tpu.matmul %1, %3, %cst {dimension_numbers = #tpu.dot_dimension_numbers<[1], [1], [0], [0], [0, 0, 1, 0], [], []>} : vector<8x32xbf16>, vector<32x32xbf16>, vector<8x32xf32> -> vector<8x32xf32>
    %cst_5 = arith.constant 0.176776692 : f32
    %5 = vector.broadcast %cst_5 : f32 to vector<8x32xf32>
    %6 = arith.mulf %4, %5 : vector<8x32xf32>
    %7 = math.exp %6 : vector<8x32xf32>
    %c0_6 = arith.constant 0 : index
    %c0_7 = arith.constant 0 : index
    %8 = vector.load %arg6[%c0_6, %c0_7] : memref<32x128xbf16, #tpu.memory_space<vmem>>, vector<32x128xbf16>
    %cst_8 = arith.constant dense<0.000000e+00> : vector<8x128xf32>
    %9 = tpu.matmul %1, %8, %cst_8 {dimension_numbers = #tpu.dot_dimension_numbers<[1], [0], [0], [1], [0, 0, 1, 1], [], []>} : vector<8x32xbf16>, vector<32x128xbf16>, vector<8x128xf32> -> vector<8x128xf32>
    %10 = vector.extract_strided_slice %7 {offsets = [0, 0], sizes = [8, 8], strides = [1, 1]} : vector<8x32xf32> to vector<8x8xf32>
    %c0_9 = arith.constant 0 : index
    %c0_10 = arith.constant 0 : index
    %c0_11 = arith.constant 0 : index
    %c0_12 = arith.constant 0 : index
    %11 = vector.load %arg5[%c0_9, %c0_10, %c0_11, %c0_12] : memref<1x4x8x8xf32, #tpu.memory_space<vmem>>, vector<1x1x8x8xf32>
    %12 = vector.shape_cast %11 : vector<1x1x8x8xf32> to vector<8x8xf32>
    %cst_13 = arith.constant 0.000000e+00 : f32
    %cst_14 = arith.constant 1.000000e+00 : f32
    %13 = vector.broadcast %cst_13 : f32 to vector<8x8xf32>
    %14 = arith.maximumf %13, %12 : vector<8x8xf32>
    %15 = vector.broadcast %cst_14 : f32 to vector<8x8xf32>
    %16 = arith.minimumf %15, %14 : vector<8x8xf32>
    %17 = arith.mulf %10, %16 : vector<8x8xf32>
    %cst_15 = arith.constant dense<0.000000e+00> : vector<8xf32>
    %18 = vector.multi_reduction <add>, %17, %cst_15 [1] : vector<8x8xf32> to vector<8xf32>
    %19 = vector.shape_cast %18 : vector<8xf32> to vector<8x1xf32>
    %cst_16 = arith.constant 1.000000e-10 : f32
    %20 = vector.broadcast %cst_16 : f32 to vector<8x1xf32>
    %21 = arith.addf %19, %20 : vector<8x1xf32>
    %22 = tpu.reciprocal %21 {approx = true} : vector<8x1xf32> -> vector<8x1xf32>
    %23 = arith.index_cast %arg0 : i32 to index
    %c0_17 = arith.constant 0 : index
    %24 = memref.load %arg2[%23, %c0_17] : memref<2x4xf32, #tpu.memory_space<smem>>
    %25 = vector.broadcast %24 : f32 to vector<8x1xf32>
    %26 = arith.mulf %22, %25 : vector<8x1xf32>
    %27 = vector.broadcast %26 : vector<8x1xf32> to vector<8x8xf32>
    %28 = arith.mulf %17, %27 : vector<8x8xf32>
    %29 = arith.truncf %28 : vector<8x8xf32> to vector<8x8xbf16>
    %30 = vector.extract_strided_slice %3 {offsets = [0, 0], sizes = [8, 32], strides = [1, 1]} : vector<32x32xbf16> to vector<8x32xbf16>
    %cst_18 = arith.constant dense<0.000000e+00> : vector<8x32xf32>
    %31 = tpu.matmul %29, %30, %cst_18 {dimension_numbers = #tpu.dot_dimension_numbers<[1], [0], [0], [1], [0, 0, 1, 1], [], []>} : vector<8x8xbf16>, vector<8x32xbf16>, vector<8x32xf32> -> vector<8x32xf32>
    %32 = arith.truncf %31 : vector<8x32xf32> to vector<8x32xbf16>
    %c0_19 = arith.constant 0 : index
    %c0_20 = arith.constant 0 : index
    %33 = vector.load %arg7[%c0_19, %c0_20] : memref<128x128xbf16, #tpu.memory_space<vmem>>, vector<32x128xbf16>
    %cst_21 = arith.constant dense<0.000000e+00> : vector<8x128xf32>
    %34 = tpu.matmul %32, %33, %cst_21 {dimension_numbers = #tpu.dot_dimension_numbers<[1], [0], [0], [1], [0, 0, 1, 1], [], []>} : vector<8x32xbf16>, vector<32x128xbf16>, vector<8x128xf32> -> vector<8x128xf32>
    %35 = arith.addf %9, %34 : vector<8x128xf32>
    %36 = vector.extract_strided_slice %7 {offsets = [0, 8], sizes = [8, 8], strides = [1, 1]} : vector<8x32xf32> to vector<8x8xf32>
    %c0_22 = arith.constant 0 : index
    %c1 = arith.constant 1 : index
    %c0_23 = arith.constant 0 : index
    %c0_24 = arith.constant 0 : index
    %37 = vector.load %arg5[%c0_22, %c1, %c0_23, %c0_24] : memref<1x4x8x8xf32, #tpu.memory_space<vmem>>, vector<1x1x8x8xf32>
    %38 = vector.shape_cast %37 : vector<1x1x8x8xf32> to vector<8x8xf32>
    %cst_25 = arith.constant 0.000000e+00 : f32
    %cst_26 = arith.constant 1.000000e+00 : f32
    %39 = vector.broadcast %cst_25 : f32 to vector<8x8xf32>
    %40 = arith.maximumf %39, %38 : vector<8x8xf32>
    %41 = vector.broadcast %cst_26 : f32 to vector<8x8xf32>
    %42 = arith.minimumf %41, %40 : vector<8x8xf32>
    %43 = arith.mulf %36, %42 : vector<8x8xf32>
    %cst_27 = arith.constant dense<0.000000e+00> : vector<8xf32>
    %44 = vector.multi_reduction <add>, %43, %cst_27 [1] : vector<8x8xf32> to vector<8xf32>
    %45 = vector.shape_cast %44 : vector<8xf32> to vector<8x1xf32>
    %cst_28 = arith.constant 1.000000e-10 : f32
    %46 = vector.broadcast %cst_28 : f32 to vector<8x1xf32>
    %47 = arith.addf %45, %46 : vector<8x1xf32>
    %48 = tpu.reciprocal %47 {approx = true} : vector<8x1xf32> -> vector<8x1xf32>
    %49 = arith.index_cast %arg0 : i32 to index
    %c1_29 = arith.constant 1 : index
    %50 = memref.load %arg2[%49, %c1_29] : memref<2x4xf32, #tpu.memory_space<smem>>
    %51 = vector.broadcast %50 : f32 to vector<8x1xf32>
    %52 = arith.mulf %48, %51 : vector<8x1xf32>
    %53 = vector.broadcast %52 : vector<8x1xf32> to vector<8x8xf32>
    %54 = arith.mulf %43, %53 : vector<8x8xf32>
    %55 = arith.truncf %54 : vector<8x8xf32> to vector<8x8xbf16>
    %56 = vector.extract_strided_slice %3 {offsets = [8, 0], sizes = [8, 32], strides = [1, 1]} : vector<32x32xbf16> to vector<8x32xbf16>
    %cst_30 = arith.constant dense<0.000000e+00> : vector<8x32xf32>
    %57 = tpu.matmul %55, %56, %cst_30 {dimension_numbers = #tpu.dot_dimension_numbers<[1], [0], [0], [1], [0, 0, 1, 1], [], []>} : vector<8x8xbf16>, vector<8x32xbf16>, vector<8x32xf32> -> vector<8x32xf32>
    %58 = arith.truncf %57 : vector<8x32xf32> to vector<8x32xbf16>
    %c32 = arith.constant 32 : index
    %c0_31 = arith.constant 0 : index
    %59 = vector.load %arg7[%c32, %c0_31] : memref<128x128xbf16, #tpu.memory_space<vmem>>, vector<32x128xbf16>
    %cst_32 = arith.constant dense<0.000000e+00> : vector<8x128xf32>
    %60 = tpu.matmul %58, %59, %cst_32 {dimension_numbers = #tpu.dot_dimension_numbers<[1], [0], [0], [1], [0, 0, 1, 1], [], []>} : vector<8x32xbf16>, vector<32x128xbf16>, vector<8x128xf32> -> vector<8x128xf32>
    %61 = arith.addf %35, %60 : vector<8x128xf32>
    %62 = vector.extract_strided_slice %7 {offsets = [0, 16], sizes = [8, 8], strides = [1, 1]} : vector<8x32xf32> to vector<8x8xf32>
    %c0_33 = arith.constant 0 : index
    %c2 = arith.constant 2 : index
    %c0_34 = arith.constant 0 : index
    %c0_35 = arith.constant 0 : index
    %63 = vector.load %arg5[%c0_33, %c2, %c0_34, %c0_35] : memref<1x4x8x8xf32, #tpu.memory_space<vmem>>, vector<1x1x8x8xf32>
    %64 = vector.shape_cast %63 : vector<1x1x8x8xf32> to vector<8x8xf32>
    %cst_36 = arith.constant 0.000000e+00 : f32
    %cst_37 = arith.constant 1.000000e+00 : f32
    %65 = vector.broadcast %cst_36 : f32 to vector<8x8xf32>
    %66 = arith.maximumf %65, %64 : vector<8x8xf32>
    %67 = vector.broadcast %cst_37 : f32 to vector<8x8xf32>
    %68 = arith.minimumf %67, %66 : vector<8x8xf32>
    %69 = arith.mulf %62, %68 : vector<8x8xf32>
    %cst_38 = arith.constant dense<0.000000e+00> : vector<8xf32>
    %70 = vector.multi_reduction <add>, %69, %cst_38 [1] : vector<8x8xf32> to vector<8xf32>
    %71 = vector.shape_cast %70 : vector<8xf32> to vector<8x1xf32>
    %cst_39 = arith.constant 1.000000e-10 : f32
    %72 = vector.broadcast %cst_39 : f32 to vector<8x1xf32>
    %73 = arith.addf %71, %72 : vector<8x1xf32>
    %74 = tpu.reciprocal %73 {approx = true} : vector<8x1xf32> -> vector<8x1xf32>
    %75 = arith.index_cast %arg0 : i32 to index
    %c2_40 = arith.constant 2 : index
    %76 = memref.load %arg2[%75, %c2_40] : memref<2x4xf32, #tpu.memory_space<smem>>
    %77 = vector.broadcast %76 : f32 to vector<8x1xf32>
    %78 = arith.mulf %74, %77 : vector<8x1xf32>
    %79 = vector.broadcast %78 : vector<8x1xf32> to vector<8x8xf32>
    %80 = arith.mulf %69, %79 : vector<8x8xf32>
    %81 = arith.truncf %80 : vector<8x8xf32> to vector<8x8xbf16>
    %82 = vector.extract_strided_slice %3 {offsets = [16, 0], sizes = [8, 32], strides = [1, 1]} : vector<32x32xbf16> to vector<8x32xbf16>
    %cst_41 = arith.constant dense<0.000000e+00> : vector<8x32xf32>
    %83 = tpu.matmul %81, %82, %cst_41 {dimension_numbers = #tpu.dot_dimension_numbers<[1], [0], [0], [1], [0, 0, 1, 1], [], []>} : vector<8x8xbf16>, vector<8x32xbf16>, vector<8x32xf32> -> vector<8x32xf32>
    %84 = arith.truncf %83 : vector<8x32xf32> to vector<8x32xbf16>
    %c64 = arith.constant 64 : index
    %c0_42 = arith.constant 0 : index
    %85 = vector.load %arg7[%c64, %c0_42] : memref<128x128xbf16, #tpu.memory_space<vmem>>, vector<32x128xbf16>
    %cst_43 = arith.constant dense<0.000000e+00> : vector<8x128xf32>
    %86 = tpu.matmul %84, %85, %cst_43 {dimension_numbers = #tpu.dot_dimension_numbers<[1], [0], [0], [1], [0, 0, 1, 1], [], []>} : vector<8x32xbf16>, vector<32x128xbf16>, vector<8x128xf32> -> vector<8x128xf32>
    %87 = arith.addf %61, %86 : vector<8x128xf32>
    %88 = vector.extract_strided_slice %7 {offsets = [0, 24], sizes = [8, 8], strides = [1, 1]} : vector<8x32xf32> to vector<8x8xf32>
    %c0_44 = arith.constant 0 : index
    %c3 = arith.constant 3 : index
    %c0_45 = arith.constant 0 : index
    %c0_46 = arith.constant 0 : index
    %89 = vector.load %arg5[%c0_44, %c3, %c0_45, %c0_46] : memref<1x4x8x8xf32, #tpu.memory_space<vmem>>, vector<1x1x8x8xf32>
    %90 = vector.shape_cast %89 : vector<1x1x8x8xf32> to vector<8x8xf32>
    %cst_47 = arith.constant 0.000000e+00 : f32
    %cst_48 = arith.constant 1.000000e+00 : f32
    %91 = vector.broadcast %cst_47 : f32 to vector<8x8xf32>
    %92 = arith.maximumf %91, %90 : vector<8x8xf32>
    %93 = vector.broadcast %cst_48 : f32 to vector<8x8xf32>
    %94 = arith.minimumf %93, %92 : vector<8x8xf32>
    %95 = arith.mulf %88, %94 : vector<8x8xf32>
    %cst_49 = arith.constant dense<0.000000e+00> : vector<8xf32>
    %96 = vector.multi_reduction <add>, %95, %cst_49 [1] : vector<8x8xf32> to vector<8xf32>
    %97 = vector.shape_cast %96 : vector<8xf32> to vector<8x1xf32>
    %cst_50 = arith.constant 1.000000e-10 : f32
    %98 = vector.broadcast %cst_50 : f32 to vector<8x1xf32>
    %99 = arith.addf %97, %98 : vector<8x1xf32>
    %100 = tpu.reciprocal %99 {approx = true} : vector<8x1xf32> -> vector<8x1xf32>
    %101 = arith.index_cast %arg0 : i32 to index
    %c3_51 = arith.constant 3 : index
    %102 = memref.load %arg2[%101, %c3_51] : memref<2x4xf32, #tpu.memory_space<smem>>
    %103 = vector.broadcast %102 : f32 to vector<8x1xf32>
    %104 = arith.mulf %100, %103 : vector<8x1xf32>
    %105 = vector.broadcast %104 : vector<8x1xf32> to vector<8x8xf32>
    %106 = arith.mulf %95, %105 : vector<8x8xf32>
    %107 = arith.truncf %106 : vector<8x8xf32> to vector<8x8xbf16>
    %108 = vector.extract_strided_slice %3 {offsets = [24, 0], sizes = [8, 32], strides = [1, 1]} : vector<32x32xbf16> to vector<8x32xbf16>
    %cst_52 = arith.constant dense<0.000000e+00> : vector<8x32xf32>
    %109 = tpu.matmul %107, %108, %cst_52 {dimension_numbers = #tpu.dot_dimension_numbers<[1], [0], [0], [1], [0, 0, 1, 1], [], []>} : vector<8x8xbf16>, vector<8x32xbf16>, vector<8x32xf32> -> vector<8x32xf32>
    %110 = arith.truncf %109 : vector<8x32xf32> to vector<8x32xbf16>
    %c96 = arith.constant 96 : index
    %c0_53 = arith.constant 0 : index
    %111 = vector.load %arg7[%c96, %c0_53] : memref<128x128xbf16, #tpu.memory_space<vmem>>, vector<32x128xbf16>
    %cst_54 = arith.constant dense<0.000000e+00> : vector<8x128xf32>
    %112 = tpu.matmul %110, %111, %cst_54 {dimension_numbers = #tpu.dot_dimension_numbers<[1], [0], [0], [1], [0, 0, 1, 1], [], []>} : vector<8x32xbf16>, vector<32x128xbf16>, vector<8x128xf32> -> vector<8x128xf32>
    %113 = arith.addf %87, %112 : vector<8x128xf32>
    %c0_55 = arith.constant 0 : index
    %c0_56 = arith.constant 0 : index
    %114 = vector.load %arg8[%c0_55, %c0_56] : memref<1x128xf32, #tpu.memory_space<vmem>>, vector<1x128xf32>
    %115 = vector.broadcast %114 : vector<1x128xf32> to vector<8x128xf32>
    %116 = arith.addf %113, %115 : vector<8x128xf32>
    %c0_57 = arith.constant 0 : index
    %c0_58 = arith.constant 0 : index
    %c0_59 = arith.constant 0 : index
    %117 = vector.load %arg9[%c0_57, %c0_58, %c0_59] : memref<1x8x128xf32, #tpu.memory_space<vmem>>, vector<1x8x128xf32>
    %118 = vector.shape_cast %117 : vector<1x8x128xf32> to vector<8x128xf32>
    %119 = vector.shape_cast %116 : vector<8x128xf32> to vector<1x8x128xf32>
    tpu.vector_store %arg9[%c0_57, %c0_58, %c0_59], %119 {strides = array<i32>} : memref<1x8x128xf32, #tpu.memory_space<vmem>>, vector<1x8x128xf32>,
    return
  }
  func.func @transform_0(%arg0: i32, %arg1: i32) -> (i32, i32) {
    %c0_i32 = arith.constant 0 : i32
    %c0_i32_0 = arith.constant 0 : i32
    %c0_i32_1 = arith.constant 0 : i32
    return %c0_i32, %c0_i32_0 : i32, i32
  }
  func.func @transform_1(%arg0: i32, %arg1: i32) -> (i32, i32, i32) {
    %c0_i32 = arith.constant 0 : i32
    %c0_i32_0 = arith.constant 0 : i32
    return %arg0, %arg1, %c0_i32 : i32, i32, i32
  }
  func.func @transform_2(%arg0: i32, %arg1: i32) -> (i32, i32, i32) {
    %c0_i32 = arith.constant 0 : i32
    %c0_i32_0 = arith.constant 0 : i32
    %c0_i32_1 = arith.constant 0 : i32
    return %arg0, %c0_i32, %c0_i32_0 : i32, i32, i32
  }
  func.func @transform_3(%arg0: i32, %arg1: i32) -> (i32, i32, i32, i32) {
    %c0_i32 = arith.constant 0 : i32
    %c0_i32_0 = arith.constant 0 : i32
    %c0_i32_1 = arith.constant 0 : i32
    return %arg0, %c0_i32, %arg1, %c0_i32_0 : i32, i32, i32, i32
  }
  func.func @transform_4(%arg0: i32, %arg1: i32) -> (i32, i32) {
    %c0_i32 = arith.constant 0 : i32
    %c0_i32_0 = arith.constant 0 : i32
    %c0_i32_1 = arith.constant 0 : i32
    return %c0_i32, %c0_i32_0 : i32, i32
  }
  func.func @transform_5(%arg0: i32, %arg1: i32) -> (i32, i32) {
    %c0_i32 = arith.constant 0 : i32
    %c0_i32_0 = arith.constant 0 : i32
    %c0_i32_1 = arith.constant 0 : i32
    return %c0_i32, %c0_i32_0 : i32, i32
  }
  func.func @transform_6(%arg0: i32, %arg1: i32) -> (i32, i32) {
    %c0_i32 = arith.constant 0 : i32
    %c0_i32_0 = arith.constant 0 : i32
    %c0_i32_1 = arith.constant 0 : i32
    return %c0_i32, %c0_i32_0 : i32, i32
  }
  func.func @transform_7(%arg0: i32, %arg1: i32) -> (i32, i32, i32) {
    %c0_i32 = arith.constant 0 : i32
    %c0_i32_0 = arith.constant 0 : i32
    return %arg0, %arg1, %c0_i32 : i32, i32, i32
  }
}

</mosaic_0001>

<bundles_post_ra>
// kernel: squeeze.1
= control target key start
LH: loop header
LB: loop body
LE: loop exit
PB: predicated region body
PF: predicated region fallthrough
CT: control target
= control target key end

     0   :  { %vm7_vm0 = vcmask 31744   ;;  %s39_s0 = inlined_call_operand.vmem [shape: f32[8], index: 0, kind: input, shape index: {}]   ;;  %s40_s1 = inlined_call_operand.vmem [shape: f32[2,4], index: 1, kind: output, shape index: {}]  }
   0x1   :  { %v4_v0 = vld [vmem:[%s39_s0] sm:$0x1]  ;;  %s22_s0 = smov 124  }
   0x2   :  { %5 = vst [vmem:[#allocation1] sm:$0x1] %v4_v0 }
   0x9   :  { %v9_v1 = vld [vmem:[#allocation1] sm:$0x1]  }
   0xa   :  { %v6_v2 = vld [vmem:[#allocation1] sm:$0x1]   ;;  %10 = vrot.lane.b32.xlu0 %v9_v1, %s22_s0 }
   0xb   :  { %8 = vst.msk [vmem:[#allocation0] sm:$0x1] %vm7_vm0, %v6_v2  }
  0x7c   :  { %v11_v3 = vpop.permute.xlu0 %10  }
  0x7d   :  { %14 = vst.msk [vmem:[#allocation0 + $0x1] sm:$0x1] %vm7_vm0, %v11_v3  }
  0x84   :  { %v18_v4 = vld [vmem:[#allocation0] sm:$0x3] }
  0x85   :  { %20 = vst [vmem:[%s40_s1] sm:$0x3] %v18_v4 }

// kernel: bert_segpos_forward.1
= control target key start
LH: loop header
LB: loop body
LE: loop exit
PB: predicated region body
PF: predicated region fallthrough
CT: control target
= control target key end

     0   :  { %12 = vsyncpa [#allocation3], 0  ;;  %s1445_s24 = smov 0   ;;  %s1447_s25 = smov 0   ;;  %s1638_s0 = inlined_call_operand.vmem [shape: f32[2,4], index: 0, kind: input, shape index: {}]   ;;  %s1639_s1 = inlined_call_operand.vmem [shape: bf16[2,8,32], index: 1, kind: input, shape index: {}]   ;;  %s1640_s2 = inlined_call_operand.vmem [shape: bf16[2,32,32], index: 2, kind: input, shape index: {}]   ;;  %s1641_s3 = inlined_call_operand.vmem [shape: f32[2,4,8,8], index: 3, kind: input, shape index: {}]   ;;  %s1642_s4 = inlined_call_operand.vmem [shape: bf16[32,128], index: 4, kind: input, shape index: {}]   ;;  %s1643_s5 = inlined_call_operand.vmem [shape: bf16[128,128], index: 5, kind: input, shape index: {}]   ;;  %s1644_s6 = inlined_call_operand.vmem [shape: f32[1,128], index: 6, kind: input, shape index: {}]   ;;  %s1645_s7 = inlined_call_operand.vmem [shape: f32[2,8,128], index: 7, kind: output, shape index: {}]  }
   0x1   :  { %s1449_s26 = smov 0  }
   0x2 LB: > { %s1146_s27 = sadd.s32 4294967295, %s1394_s26   ;;  %s30_s28 = sadd.s32 1, %s1390_s25  ;;  %s1394_s26 = sphi %s1449_s26, %s18_s26   ;;  %s1390_s25 = sphi %s1447_s25, %s1649_s25   ;;  %s1386_s24 = sphi %s1445_s24, %s1648_s24  }
   0x3   : > { %p32_p0 = scmp.ge.s32.totalorder %s30_s28, 2  ;;  %p1148_p1 = scmp.ge.s32.totalorder %s1394_s26, 1 }
   0x4   : > { %p229_p2 = scmp.lt.s32.totalorder %s1394_s26, 3  ;;  %p1470_p4 = scmp.eq.s32.totalorder %s1146_s27, 0 }
   0x5   : > { %s1651_s28 = smov (%p32_p0, %s30_s28), 0  ;;  %s242_s10 = sshll.u32 %s1638_s0, 4  ;;  %s243_s10 = int_to_ptr.vmem [resolvable:$true] %s242_s10 }
   0x6   : > { %p1466_p3 = pnand %p1148_p1, %p229_p2  ;;  %s1353_s11 = scalar_lea.vmem %s243_s10, 32 }
   0x7   : > { %p1354_p7 = scmp.ne.s32.totalorder %s243_s10, %s1353_s11  ;;  %p1361_p11 = scmp.lt.s32.totalorder %s243_s10, %s243_s10 }
   0x8   : > { %p1292_p5 = pneg %p1466_p3  ;;  %p1362_p12 = scmp.lt.s32.totalorder %s1353_s11, %s1353_s11 }
   0xa   : > { %p1293_p6 = pnand %p1470_p4, %p1292_p5  ;;  %p1363_p13 = por %p1362_p12, %p1361_p11 }
   0xc   : > { %p1355_p8 = pneg %p1293_p6 }
   0xe   : > { %p1356_p9 = pnand %p1355_p8, %p1354_p7 }
  0x10   : > { %p1357_p10 = pneg %p1356_p9 }
  0x12   : > { %p1364_p0 = pnand %p1363_p13, %p1357_p10 }
  0x14   : > { %1367 = shalt.err (!%p1364_p0)
}
  0x15   : > { %s1396_s12 = smov [#allocation2]   ;;  %293 = sbr.rel (%p1466_p3) target bundleno = 1124 (0x464), region = 48 }
  0x16   : > { %1295 = dma.vmem_to_smem (!%p1293_p6), %s243_s10, 32, %s1396_s12, [#allocation3]  }
  0x1c   : > { %1381 = dma.done.wait (%p1470_p4), [#allocation3], 32  }
  0x1d   : > { %1383 = vsyncadd (%p1470_p4), [#allocation3], 4294967264 }
  0x1e   : > { %299 = sfence }
  0x1f   : > { %p343_p1 = scmp.lt.s32.totalorder %s1386_s24, 1  ;;  %v1397_v0 = vmov 0.0   ;;  %vm1398_vm0 = vmmov 0   ;;  %vm386_vm1 = vcmask 261120   ;;  %s1399_s22 = smov 8   ;;  %vm447_vm2 = vcmask 64512  }
  0x20   : > { %1216 = vmatprep.subr.bf16.mxu0 %v1397_v0  ;;  %1220 = vmatprep.mubr.msk.bf16.mxu0 %vm1398_vm0, %v1397_v0  ;;  %s1400_s23 = smov 24   ;;  %s1401_s29 = smov 16   ;;  %vm462_vm3 = vcmask 1043456  }
  0x21   : > { %s1492_s13 = scalar_select %p343_p1, %s1386_s24, 1  ;;  %1224 = vmatprep.subr.bf16.mxu1 %v1397_v0  ;;  %1226 = vmatprep.mubr.msk.bf16.mxu1 %vm1398_vm0, %v1397_v0 }
  0x22   : > { %s1402_s10 = smov 112   ;;  %s1403_s11 = smov 120  }
  0x23   : > { %s1188_s14 = sshll.u32 %s1492_s13, 4  ;;  %s1189_s18 = sshll.u32 %s1492_s13, 5 }
  0x24   : > { %s354_s17 = scalar_lea.vmem %s1640_s2, %s1188_s14  ;;  %s1515_s21 = scalar_lea.vmem %s1641_s3, %s1189_s18 }
  0x25   : > { %v1501_v1 = vld [vmem:[%s354_s17] sm:$0xf]  ;;  %v1503_v2 = vld [vmem:[%s354_s17 + $0x4] sm:$0xf]  ;;  %v1507_v4 = vld [vmem:[%s354_s17 + $0x8] sm:$0xf] }
  0x26   : > { %v1159_v3 = vcombine.low %v1501_v1, %v1503_v2  ;;  %v1509_v5 = vld [vmem:[%s354_s17 + $0xc] sm:$0xf]  ;;  %v1180_v8 = vld [vmem:[%s1515_s21 + $0x18] sm:$0xff]  ;;  %v1175_v9 = vld [vmem:[%s1515_s21 + $0x10] sm:$0xff]  ;;  %s1153_s27 = sshll.u32 %s1492_s13, 2  ;;  %s1404_s12 = smov 104  }
  0x27   : > { %v1170_v7 = vld [vmem:[%s1515_s21 + $0x8] sm:$0xff]  ;;  %v888_v11 = vmax.f32 %v1180_v8, 0.0  ;;  %v754_v12 = vmax.f32 %v1175_v9, 0.0  ;;  %v1160_v13 = vcombine.low %v1507_v4, %v1509_v5  ;;  %s349_s9 = scalar_lea.vmem %s1639_s1, %s1153_s27  ;;  %v443_v32 = vld [vmem:[%s1515_s21] sm:$0xff]  ;;  %v464_v43 = vsel %vm462_vm3, %v1501_v1, 0  ;;  %s1162_s14 = sshll.u32 %s1386_s24, 7 }
  0x28   : > { %v391_v6 = vsel %vm386_vm1, %v1159_v3, 0  ;;  %v620_v10 = vmax.f32 %v1170_v7, 0.0  ;;  %v1530_v18 = vld [vmem:[%s349_s9] sm:$0xf]  ;;  %v444_v33 = vmax.f32 %v443_v32, 0.0  ;;  %1225 = vmatpush3.bf16.msra.mxu1 %v464_v43  ;;  %v649_v44 = vsel %vm462_vm3, %v1503_v2, 0 }
  0x29   : > { %1217 = vmatpush3.bf16.xpose.msra.mxu0 %v391_v6  ;;  %v889_v15 = vmin.f32 %v888_v11, 1.0  ;;  %v755_v16 = vmin.f32 %v754_v12, 1.0  ;;  %v394_v17 = vsel %vm386_vm1, %v1160_v13, 0  ;;  %1230 = vmatprep.subr.bf16.mxu1 %v1397_v0  ;;  %s636_s15 = sadd.s32 1, %s1162_s14  ;;  %s770_s16 = sadd.s32 2, %s1162_s14  ;;  %v1333_v11 = vld [vmem:[%s1643_s5] sm:$0xff]  }
  0x2a   : > { %1218 = vmatprep.subr.bf16.mxu0 %v1397_v0  ;;  %v621_v14 = vmin.f32 %v620_v10, 1.0  ;;  %v445_v38 = vmin.f32 %v444_v33, 1.0  ;;  %s637_s17 = sld [smem:[#allocation2 + %s636_s15]]  ;;  %s904_s19 = sadd.s32 3, %s1162_s14  ;;  %v1334_v13 = vld [vmem:[%s1643_s5 + $0x8] sm:$0xff]  }
  0x2b   : > { %891 = vrot.lane.b32.xlu1 %v889_v15, %s1400_s23  ;;  %s771_s18 = sld [smem:[#allocation2 + %s770_s16]]  ;;  %v1340_v32 = vld [vmem:[%s1643_s5 + $0x28] sm:$0xff]  }
  0x2c   : > { %623 = vrot.lane.b32.xlu0 %v621_v14, %s1399_s22  ;;  %s905_s20 = sld [smem:[#allocation2 + %s904_s19]]  ;;  %v783_v14 = vsel %vm462_vm3, %v1507_v4, 0  ;;  %s1158_s22 = sshll.u32 %s1492_s13, 3 }
  0x2d   : > { %s454_s24 = sld [smem:[#allocation2 + %s1162_s14]]  ;;  %s369_s8 = scalar_lea.vmem %s1645_s7, %s1158_s22 }
  0x30   : > { %757 = vrot.lane.b32.xlu0 %v755_v16, %s1401_s29  ;;  %v638_v53 = vstv %s637_s17  ;;  %v917_v16 = vsel %vm462_vm3, %v1509_v5, 0  ;;  %v1336_v5 = vld [vmem:[%s1642_s4 + $0x8] sm:$0xff]  }
  0x31   : > { %1219 = vmatpush3.bf16.xpose.msra.mxu0 %v394_v17  ;;  %v772_v54 = vstv %s771_s18 }
  0x32   : > { %1246 = vmatprep.subr.bf16.mxu0 %v1397_v0  ;;  %v906_v59 = vstv %s905_s20 }
  0x33   : > { %v455_v3 = vstv %s454_s24 }
  0x38   : > { %1221 = vmatmul.mubr.msk.bf16.vlgmr.msra.gmra.mrb[0].mxu0 %vm386_vm1, %v1530_v18 }
  0x39   : > { %1248 = vmatprep.mubr.msk.bf16.mxu0 %vm1398_vm0, %v1397_v0  ;;  %1247 = vmatpush3.bf16.msra.mxu0 %v649_v44 }
  0x3a   : > { %1260 = vmatprep.subr.bf16.mxu0 %v1397_v0 }
  0x9d   : > { %v892_v30 = vpop.permute.xlu1 %891 }
  0x9e   : > { %v624_v25 = vpop.permute.xlu0 %623 }
  0xa2   : > { %v758_v26 = vpop.permute.xlu0 %757 }
 0x10b   : > { %v430_v19 = vpop.f32.mrb[0].mxu0 }
 0x10c   : > { %v436_v20 = vmul.f32 0.17677669, %v430_v19  ;;  %v1222_v21 = vpop.f32.mrb[1].mxu0 }
 0x10d   : > { %v433_v22 = vpop.f32.mrb[2].mxu0 }
 0x10e   : > { %v437_v23 = vmul.f32 1.442695, %v436_v20  ;;  %v1223_v24 = vpop.f32.mrb[3].mxu0  ;;  %v1335_v20 = vld [vmem:[%s1642_s4] sm:$0xff]  }
 0x110   : > { %1343 = vpow2.f32 %v437_v23 }
 0x11a   : > { %v1344_v27 = vpop.eup %1343 }
 0x11b   : > { %v626_v28 = vmul.f32 %v1344_v27, %v624_v25  ;;  %v760_v29 = vmul.f32 %v1344_v27, %v758_v26  ;;  %v894_v31 = vmul.f32 %v1344_v27, %v892_v30  ;;  %v446_v41 = vmul.f32 %v1344_v27, %v445_v38  ;;  %v1337_v25 = vld [vmem:[%s1643_s5 + $0x10] sm:$0xff]   ;;  %v1338_v26 = vld [vmem:[%s1643_s5 + $0x18] sm:$0xff]  }
 0x11d   : > { %762 = vrot.lane.b32.xlu0 %v760_v29, %s1402_s10  ;;  %628 = vrot.lane.b32.xlu1 %v626_v28, %s1403_s11  ;;  %v448_v42 = vsel %vm447_vm2, %v446_v41, 0.0 }
 0x121   : > { %896 = vrot.lane.b32.xlu1 %v894_v31, %s1404_s12 }
 0x18f   : > { %v763_v34 = vpop.permute.xlu0 %762  ;;  %v629_v35 = vpop.permute.xlu1 %628 }
 0x190   : > { %v765_v36 = vsel %vm447_vm2, %v763_v34, 0.0  ;;  %v631_v37 = vsel %vm447_vm2, %v629_v35, 0.0  ;;  %v1341_v34 = vld [vmem:[%s1643_s5 + $0x30] sm:$0xff]  }
 0x191   : > { %766 = vadd.xlane.f32.xlu1 %v765_v36  ;;  %632 = vadd.xlane.f32.xlu0 %v631_v37 }
 0x193   : > { %v897_v39 = vpop.permute.xlu1 %896 }
 0x194   : > { %v899_v40 = vsel %vm447_vm2, %v897_v39, 0.0  ;;  %v1342_v39 = vld [vmem:[%s1643_s5 + $0x38] sm:$0xff]  }
 0x195   : > { %900 = vadd.xlane.f32.xlu0 %v899_v40 }
 0x199   : > { %449 = vadd.xlane.f32.xlu0 %v448_v42 }
 0x21e   : > { %v633_v45 = vpop.xlane.xlu0 %632  ;;  %v767_v46 = vpop.xlane.xlu1 %766 }
 0x21f   : > { %v634_v47 = vadd.f32 1e-10, %v633_v45  ;;  %v768_v48 = vadd.f32 1e-10, %v767_v46 }
 0x221   : > { %1345 = vrcp.f32 %v634_v47 }
 0x222   : > { %1347 = vrcp.f32 %v768_v48  ;;  %v901_v49 = vpop.xlane.xlu0 %900 }
 0x223   : > { %v902_v50 = vadd.f32 1e-10, %v901_v49 }
 0x225   : > { %1349 = vrcp.f32 %v902_v50 }
 0x226   : > { %v450_v51 = vpop.xlane.xlu0 %449 }
 0x227   : > { %v451_v52 = vadd.f32 1e-10, %v450_v51 }
 0x229   : > { %1351 = vrcp.f32 %v451_v52 }
 0x22b   : > { %v1346_v55 = vpop.eup %1345 }
 0x22c   : > { %v1348_v56 = vpop.eup %1347  ;;  %v639_v57 = vmul.f32 %v1346_v55, %v638_v53 }
 0x22d   : > { %v773_v58 = vmul.f32 %v1348_v56, %v772_v54 }
 0x22e   : > { %v640_v60 = vmul.f32 %v639_v57, %v626_v28  ;;  %v1339_v28 = vld [vmem:[%s1643_s5 + $0x20] sm:$0xff]  }
 0x22f   : > { %v1350_v61 = vpop.eup %1349  ;;  %v774_v62 = vmul.f32 %v773_v58, %v760_v29 }
 0x230   : > { %v641_v63 = vpack.c.bf16 %v640_v60, %v640_v60  ;;  %v907_v1 = vmul.f32 %v1350_v61, %v906_v59 }
 0x231   : > { %v775_v2 = vpack.c.bf16 %v774_v62, %v774_v62 }
 0x232   : > { %643 = vrot.lane.b32.xlu1 %v641_v63, %s1403_s11  ;;  %v908_v6 = vmul.f32 %v907_v1, %v894_v31  ;;  %v1185_v1 = vld [vmem:[%s1644_s6] ss:$0 sm:$0xff] }
 0x233   : > { %v1352_v7 = vpop.eup %1351  ;;  %777 = vrot.lane.b32.xlu0 %v775_v2, %s1402_s10 }
 0x234   : > { %v909_v8 = vpack.c.bf16 %v908_v6, %v908_v6  ;;  %v456_v9 = vmul.f32 %v1352_v7, %v455_v3 }
 0x236   : > { %911 = vrot.lane.b32.xlu1 %v909_v8, %s1404_s12  ;;  %v457_v10 = vmul.f32 %v456_v9, %v446_v41 }
 0x238   : > { %v458_v12 = vpack.c.bf16 %v457_v10, %v457_v10 }
 0x23a   : > { %1227 = vmatmul.mubr.msk.bf16.vlgmr.msra.gmra.mrb[0].mxu1 %vm447_vm2, %v458_v12 }
 0x23b   : > { %1231 = vmatpush3.bf16.msra.mxu1 %v1333_v11  ;;  %1234 = vmatprep.mubr.msk.bf16.mxu1 %vm1398_vm0, %v1397_v0 }
 0x23c   : > { %1232 = vmatprep.subr.bf16.mxu1 %v1397_v0 }
 0x23f   : > { %1233 = vmatpush3.bf16.msra.mxu1 %v1334_v13 }
 0x240   : > { %1238 = vmatprep.subr.bf16.mxu1 %v1397_v0 }
 0x2a4   : > { %v644_v15 = vpop.permute.xlu1 %643 }
 0x2a5   : > { %1249 = vmatmul.mubr.msk.bf16.vlgmr.msra.gmra.mrb[4].mxu0 %vm447_vm2, %v644_v15  ;;  %v778_v17 = vpop.permute.xlu0 %777 }
 0x2a6   : > { %1261 = vmatpush3.bf16.msra.mxu0 %v783_v14  ;;  %1262 = vmatprep.mubr.msk.bf16.mxu0 %vm1398_vm0, %v1397_v0 }
 0x2a7   : > { %1274 = vmatprep.subr.bf16.mxu0 %v1397_v0 }
 0x2a8   : > { %v912_v4 = vpop.permute.xlu1 %911 }
 0x2ad   : > { %1263 = vmatmul.mubr.msk.bf16.vlgmr.msra.gmra.mrb[8].mxu0 %vm447_vm2, %v778_v17 }
 0x2ae   : > { %1275 = vmatpush3.bf16.msra.mxu0 %v917_v16  ;;  %1276 = vmatprep.mubr.msk.bf16.mxu0 %vm1398_vm0, %v1397_v0 }
 0x2b5   : > { %1277 = vmatmul.mubr.msk.bf16.vlgmr.msra.gmra.mrb[12].mxu0 %vm447_vm2, %v912_v4 }
 0x30d   : > { %v500_v19 = vpop.f32.mrb[0].mxu1 }
 0x30e   : > { %v506_v21 = vpack.c.bf16 %v500_v19, %v500_v19  ;;  %v1228_v22 = vpop.f32.mrb[1].mxu1 }
 0x30f   : > { %v503_v23 = vpop.f32.mrb[2].mxu1 }
 0x310   : > { %v1229_v24 = vpop.f32.mrb[3].mxu1  ;;  %1235 = vmatmul.mubr.msk.bf16.vlgmr.msra.gmra.mrb[4].mxu1 %vm386_vm1, %v506_v21 }
 0x311   : > { %1239 = vmatpush3.bf16.msra.mxu1 %v1335_v20  ;;  %1242 = vmatprep.mubr.msk.bf16.mxu1 %vm1398_vm0, %v1397_v0 }
 0x312   : > { %1240 = vmatprep.subr.bf16.mxu1 %v1397_v0 }
 0x315   : > { %1241 = vmatpush3.bf16.msra.mxu1 %v1336_v5 }
 0x316   : > { %1252 = vmatprep.subr.bf16.mxu1 %v1397_v0 }
 0x318   : > { %1243 = vmatmul.mubr.msk.bf16.vlgmr.msra.gmra.mrb[8].mxu1 %vm386_vm1, %v1530_v18 }
 0x319   : > { %1253 = vmatpush3.bf16.msra.mxu1 %v1337_v25  ;;  %1256 = vmatprep.mubr.msk.bf16.mxu1 %vm1398_vm0, %v1397_v0 }
 0x31a   : > { %1254 = vmatprep.subr.bf16.mxu1 %v1397_v0 }
 0x31d   : > { %1255 = vmatpush3.bf16.msra.mxu1 %v1338_v26 }
 0x31e   : > { %1266 = vmatprep.subr.bf16.mxu1 %v1397_v0 }
 0x378   : > { %v685_v27 = vpop.f32.mrb[4].mxu0 }
 0x379   : > { %v691_v29 = vpack.c.bf16 %v685_v27, %v685_v27  ;;  %v1250_v18 = vpop.f32.mrb[5].mxu0 }
 0x37a   : > { %v688_v30 = vpop.f32.mrb[6].mxu0 }
 0x37b   : > { %v1251_v31 = vpop.f32.mrb[7].mxu0  ;;  %1257 = vmatmul.mubr.msk.bf16.vlgmr.msra.gmra.mrb[12].mxu1 %vm386_vm1, %v691_v29 }
 0x37c   : > { %1267 = vmatpush3.bf16.msra.mxu1 %v1339_v28  ;;  %1270 = vmatprep.mubr.msk.bf16.mxu1 %vm1398_vm0, %v1397_v0 }
 0x37d   : > { %1268 = vmatprep.subr.bf16.mxu1 %v1397_v0 }
 0x380   : > { %1269 = vmatpush3.bf16.msra.mxu1 %v1340_v32  ;;  %v819_v33 = vpop.f32.mrb[8].mxu0 }
 0x381   : > { %v825_v35 = vpack.c.bf16 %v819_v33, %v819_v33  ;;  %v1264_v36 = vpop.f32.mrb[9].mxu0  ;;  %1280 = vmatprep.subr.bf16.mxu1 %v1397_v0 }
 0x382   : > { %v822_v37 = vpop.f32.mrb[10].mxu0 }
 0x383   : > { %v1265_v38 = vpop.f32.mrb[11].mxu0  ;;  %1271 = vmatmul.mubr.msk.bf16.vlgmr.msra.gmra.mrb[16].mxu1 %vm386_vm1, %v825_v35 }
 0x384   : > { %1281 = vmatpush3.bf16.msra.mxu1 %v1341_v34  ;;  %1284 = vmatprep.mubr.msk.bf16.mxu1 %vm1398_vm0, %v1397_v0 }
 0x385   : > { %1282 = vmatprep.subr.bf16.mxu1 %v1397_v0 }
 0x388   : > { %1283 = vmatpush3.bf16.msra.mxu1 %v1342_v39  ;;  %v953_v40 = vpop.f32.mrb[12].mxu0 }
 0x389   : > { %v959_v41 = vpack.c.bf16 %v953_v40, %v953_v40  ;;  %v1278_v42 = vpop.f32.mrb[13].mxu0 }
 0x38a   : > { %v956_v43 = vpop.f32.mrb[14].mxu0 }
 0x38b   : > { %v1279_v44 = vpop.f32.mrb[15].mxu0  ;;  %1285 = vmatmul.mubr.msk.bf16.vlgmr.msra.gmra.mrb[20].mxu1 %vm386_vm1, %v959_v41 }
 0x3e3   : > { %v560_v45 = vpop.f32.mrb[4].mxu1 }
 0x3e4   : > { %v1236_v46 = vpop.f32.mrb[5].mxu1 }
 0x3e5   : > { %v563_v47 = vpop.f32.mrb[6].mxu1 }
 0x3e6   : > { %v1237_v48 = vpop.f32.mrb[7].mxu1 }
 0x3eb   : > { %v612_v49 = vpop.f32.mrb[8].mxu1 }
 0x3ec   : > { %v613_v50 = vadd.f32 %v612_v49, %v560_v45  ;;  %v1244_v51 = vpop.f32.mrb[9].mxu1 }
 0x3ed   : > { %v615_v52 = vpop.f32.mrb[10].mxu1 }
 0x3ee   : > { %v1245_v53 = vpop.f32.mrb[11].mxu1 }
 0x44e   : > { %v745_v54 = vpop.f32.mrb[12].mxu1 }
 0x44f   : > { %v751_v0 = vadd.f32 %v745_v54, %v613_v50  ;;  %v1258_v55 = vpop.f32.mrb[13].mxu1 }
 0x450   : > { %v748_v56 = vpop.f32.mrb[14].mxu1 }
 0x451   : > { %v1259_v57 = vpop.f32.mrb[15].mxu1 }
 0x456   : > { %v879_v58 = vpop.f32.mrb[16].mxu1 }
 0x457   : > { %v885_v59 = vadd.f32 %v879_v58, %v751_v0  ;;  %v1272_v60 = vpop.f32.mrb[17].mxu1 }
 0x458   : > { %v882_v61 = vpop.f32.mrb[18].mxu1 }
 0x459   : > { %v1273_v62 = vpop.f32.mrb[19].mxu1 }
 0x45e   : > { %v1013_v63 = vpop.f32.mrb[20].mxu1 }
 0x45f   : > { %v1019_v2 = vadd.f32 %v1013_v63, %v885_v59  ;;  %v1286_v3 = vpop.f32.mrb[21].mxu1 }
 0x460   : > { %v1016_v6 = vpop.f32.mrb[22].mxu1 }
 0x461   : > { %v1027_v7 = vadd.f32 %v1185_v1, %v1019_v2  ;;  %v1287_v8 = vpop.f32.mrb[23].mxu1 }
 0x463   : > { %1028 = vst [vmem:[%s369_s8] sm:$0xff] %v1027_v7 }
 0x464 PF: > { %s18_s26 = sadd.s32 1, %s1394_s26   ;;  %s1648_s24 = smov %s1390_s25 }
 0x465   : > { %p15_p2 = scmp.ge.s32.totalorder %s18_s26, 4   ;;  %s1649_s25 = smov %s1651_s28 }
 0x467   :  { %17 = sbr.rel (!%p15_p2) target bundleno = 2 (0x2), region = 92 }
 0x46e   :  { %1054 = vsyncpa [#allocation3], 1 }
 0x46f   :  { %1056 = vsyncpa [#allocation3 + $0x1], 1 }

</bundles_post_ra>
